<compile_context>
chip_gen: v7x
topology: tpu7x:2x2x1
jax: 0.10.0
libtpu: 0.0.40
codegen_flags: <defaults>
</compile_context>

<pallas_src>
import functools

import jax
import jax.numpy as jnp
from jax.experimental import pallas as pl
from jax.experimental.pallas import tpu as pltpu


# ---------------------------------------------------------------------------
# Shared in-kernel helpers
# ---------------------------------------------------------------------------

def _sigmoid(z):
    return 1.0 / (1.0 + jnp.exp(-z))


def _attention_from_pooled(max_in, avg_in, w1_ref, b1_ref, w2_ref, b2_ref):
    """max_in/avg_in: (Bt, C) f32 -> channel attention Mc: (Bt, C) f32.

    Weight refs hold both branches stacked: index 0 = max branch, index 1 = avg branch.
    Matches the PyTorch module: sigmoid at the end of each branch MLP *and* a sigmoid on
    the summed branch outputs.
    """
    def mlp(v, w1, b1, w2, b2):
        h = jnp.dot(v, w1, preferred_element_type=jnp.float32) + b1
        h = jnp.maximum(h, 0.0)                                     # ReLU
        o = jnp.dot(h, w2, preferred_element_type=jnp.float32) + b2
        return _sigmoid(o)

    max_w = mlp(max_in, w1_ref[0], b1_ref[0], w2_ref[0], b2_ref[0])
    avg_w = mlp(avg_in, w1_ref[1], b1_ref[1], w2_ref[1], b2_ref[1])
    return _sigmoid(max_w + avg_w)                                  # (Bt, C) f32


# ---------------------------------------------------------------------------
# Fused single-pass kernel (the common case: one (Bt, C, HW) slab fits VMEM)
# ---------------------------------------------------------------------------

def _fused_kernel(x_ref, w1_ref, b1_ref, w2_ref, b2_ref, o_ref, *, inv_hw):
    x = x_ref[...]                                                  # (Bt, C, HW) native dtype
    # Global pooling with no full-tile f32 temporaries: only the (Bt, C) results are f32.
    max_in = jnp.max(x, axis=-1).astype(jnp.float32)                # (Bt, C)
    avg_in = jnp.sum(x, axis=-1, dtype=jnp.float32) * inv_hw        # (Bt, C)
    mc = _attention_from_pooled(max_in, avg_in, w1_ref, b1_ref, w2_ref, b2_ref)
    # Rescale in the output's native dtype (only the tiny (Bt, C) vector is cast).
    o_ref[...] = x * mc.astype(o_ref.dtype)[:, :, None]


# ---------------------------------------------------------------------------
# Two-pass fallback (single channel plane exceeds the VMEM block budget)
# ---------------------------------------------------------------------------

def _pool_mlp_kernel(x_ref, w1_ref, b1_ref, w2_ref, b2_ref, mc_ref,
                     max_sc, sum_sc, *, hw, hw_tile, inv_hw, mask_tail):
    h = pl.program_id(1)

    @pl.when(h == 0)
    def _():
        max_sc[...] = jnp.full_like(max_sc, jnp.finfo(jnp.float32).min)
        sum_sc[...] = jnp.zeros_like(sum_sc)

    x = x_ref[...]                                                  # (Bt, C, hw_tile)
    if mask_tail:
        # HW is not a multiple of hw_tile: mask the OOB lanes of the final spatial block
        # (finite min for the max, zeros for the sum).
        lane = jax.lax.broadcasted_iota(jnp.int32, x.shape, 2) + h * hw_tile
        valid = lane < hw
        xf = x.astype(jnp.float32)
        blk_max = jnp.max(jnp.where(valid, xf, jnp.finfo(jnp.float32).min), axis=-1)
        blk_sum = jnp.sum(jnp.where(valid, xf, 0.0), axis=-1)
    else:
        blk_max = jnp.max(x, axis=-1).astype(jnp.float32)
        blk_sum = jnp.sum(x, axis=-1, dtype=jnp.float32)

    max_sc[...] = jnp.maximum(max_sc[...], blk_max)
    sum_sc[...] = sum_sc[...] + blk_sum

    @pl.when(h == pl.num_programs(1) - 1)
    def _():
        mc = _attention_from_pooled(max_sc[...], sum_sc[...] * inv_hw,
                                    w1_ref, b1_ref, w2_ref, b2_ref)  # (Bt, C)
        mc_ref[...] = mc[:, :, None]                                 # (Bt, C, 1)


def _rescale_kernel(mc_ref, x_ref, o_ref):
    # mc_ref: (Bt, C, 1) f32; x_ref/o_ref: (Bt, C, hw_tile) native dtype.
    o_ref[...] = x_ref[...] * mc_ref[...].astype(o_ref.dtype)


# ---------------------------------------------------------------------------
# Per-generation VMEM budgets
# ---------------------------------------------------------------------------

@functools.lru_cache(maxsize=1)
def _vmem_budgets():
    """Returns (per-block byte budget for the x/out tiles, scoped vmem limit)."""
    cap = None
    try:
        cap = getattr(pltpu.get_tpu_info(), "vmem_capacity_bytes", None)
    except Exception:
        cap = None
    if cap is not None and cap >= 100 * 1024 * 1024:
        # v5e / v6e: 128 MiB physical VMEM.
        return 12 * 1024 * 1024, 64 * 1024 * 1024
    # v7x (64 MiB per TensorCore) or unknown: stay conservative.
    return 8 * 1024 * 1024, 48 * 1024 * 1024


# ---------------------------------------------------------------------------
# Parameters / reference
# ---------------------------------------------------------------------------

def init_params(key, in_channel, r=0.5):
    """Deterministic PyTorch-Linear-style init (uniform +/- 1/sqrt(fan_in))."""
    hidden = max(1, int(in_channel * r))
    keys = jax.random.split(key, 8)

    def linear(kw, kb, fan_in, fan_out):
        bound = 1.0 / float(fan_in) ** 0.5
        w = jax.random.uniform(kw, (fan_out, fan_in), jnp.float32, -bound, bound)
        b = jax.random.uniform(kb, (fan_out,), jnp.float32, -bound, bound)
        return w, b

    w1m, b1m = linear(keys[0], keys[1], in_channel, hidden)
    w2m, b2m = linear(keys[2], keys[3], hidden, in_channel)
    w1a, b1a = linear(keys[4], keys[5], in_channel, hidden)
    w2a, b2a = linear(keys[6], keys[7], hidden, in_channel)
    return dict(w1m=w1m, b1m=b1m, w2m=w2m, b2m=b2m,
                w1a=w1a, b1a=b1a, w2a=w2a, b2a=b2a)


def channel_attention_ref(x, params):
    """Pure-JAX reference mirroring the PyTorch forward (incl. per-branch sigmoids)."""
    B, C, H, W = x.shape

    def sigmoid(z):
        return 1.0 / (1.0 + jnp.exp(-z))

    def mlp(v, w1, b1, w2, b2):
        h = jnp.maximum(v @ w1.T + b1, 0.0)
        return sigmoid(h @ w2.T + b2)

    flat = x.reshape(B, C, -1)
    max_in = jnp.max(flat, axis=-1)
    avg_in = jnp.mean(flat, axis=-1)
    max_w = mlp(max_in, params["w1m"], params["b1m"], params["w2m"], params["b2m"])
    avg_w = mlp(avg_in, params["w1a"], params["b1a"], params["w2a"], params["b2a"])
    weight = sigmoid(max_w + avg_w)                                 # (B, C)
    return weight[:, :, None, None] * x


# ---------------------------------------------------------------------------
# Wrapper
# ---------------------------------------------------------------------------

@functools.partial(jax.jit, static_argnames=("force_two_pass", "hw_tile"))
def channel_attention(x, params, *, force_two_pass=False, hw_tile=None):
    B, C, H, W = x.shape
    HW = H * W
    itemsize = jnp.dtype(x.dtype).itemsize
    hidden = params["w1m"].shape[0]
    block_budget, vmem_limit = _vmem_budgets()

    # NCHW -> (B, C, HW): channels on sublanes, flattened spatial on lanes.
    # No padding / slicing in the wrapper (both reshapes are free).
    x_r = x.reshape(B, C, HW)

    # Pack the two tiny MLP branches: index 0 = max branch, index 1 = avg branch.
    w1 = jnp.stack([params["w1m"].T, params["w1a"].T])              # (2, C, hidden)
    b1 = jnp.stack([params["b1m"], params["b1a"]])[:, None, :]      # (2, 1, hidden)
    w2 = jnp.stack([params["w2m"].T, params["w2a"].T])              # (2, hidden, C)
    b2 = jnp.stack([params["b2m"], params["b2a"]])[:, None, :]      # (2, 1, C)

    plane_bytes = C * HW * itemsize

    if not force_two_pass and plane_bytes <= block_budget:
        # ---------------- fused single-pass path ----------------
        # Cap bt so the batch grid has >= 2 steps whenever B >= 2 (v7x megacore).
        bt = max(1, min(block_budget // plane_bytes, (B + 1) // 2))
        grid = (pl.cdiv(B, bt),)
        kernel = functools.partial(_fused_kernel, inv_hw=1.0 / HW)
        out = pl.pallas_call(
            kernel,
            out_shape=jax.ShapeDtypeStruct((B, C, HW), x.dtype),
            grid_spec=pltpu.PrefetchScalarGridSpec(
                num_scalar_prefetch=0,
                grid=grid,
                in_specs=[
                    pl.BlockSpec((bt, C, HW), lambda i: (i, 0, 0)),
                    pl.BlockSpec((2, C, hidden), lambda i: (0, 0, 0)),
                    pl.BlockSpec((2, 1, hidden), lambda i: (0, 0, 0)),
                    pl.BlockSpec((2, hidden, C), lambda i: (0, 0, 0)),
                    pl.BlockSpec((2, 1, C), lambda i: (0, 0, 0)),
                ],
                out_specs=pl.BlockSpec((bt, C, HW), lambda i: (i, 0, 0)),
            ),
            compiler_params=pltpu.CompilerParams(
                dimension_semantics=("parallel",),
                vmem_limit_bytes=vmem_limit,
            ),
        )(x_r, w1, b1, w2, b2)
        return out.reshape(B, C, H, W)

    # ---------------- two-pass HW-tiled fallback ----------------
    if hw_tile is None:
        hw_tile = max(128, ((block_budget // (C * itemsize)) // 128) * 128)
    hw_tile = min(hw_tile, HW)
    chunk_bytes = C * hw_tile * itemsize
    bt = max(1, min(block_budget // max(chunk_bytes, 1), (B + 1) // 2))
    nb = pl.cdiv(B, bt)
    nh = pl.cdiv(HW, hw_tile)
    mask_tail = (HW % hw_tile) != 0

    pool_kernel = functools.partial(
        _pool_mlp_kernel, hw=HW, hw_tile=hw_tile, inv_hw=1.0 / HW, mask_tail=mask_tail)

    # Pass 1: pooled max/avg partials over spatial tiles + the tiny MLPs -> Mc (B, C, 1).
    mc = pl.pallas_call(
        pool_kernel,
        out_shape=jax.ShapeDtypeStruct((B, C, 1), jnp.float32),
        grid_spec=pltpu.PrefetchScalarGridSpec(
            num_scalar_prefetch=0,
            grid=(nb, nh),
            in_specs=[
                pl.BlockSpec((bt, C, hw_tile), lambda i, h: (i, 0, h)),
                pl.BlockSpec((2, C, hidden), lambda i, h: (0, 0, 0)),
                pl.BlockSpec((2, 1, hidden), lambda i, h: (0, 0, 0)),
                pl.BlockSpec((2, hidden, C), lambda i, h: (0, 0, 0)),
                pl.BlockSpec((2, 1, C), lambda i, h: (0, 0, 0)),
            ],
            out_specs=pl.BlockSpec((bt, C, 1), lambda i, h: (i, 0, 0)),
            scratch_shapes=[pltpu.VMEM((bt, C), jnp.float32),
                            pltpu.VMEM((bt, C), jnp.float32)],
        ),
        compiler_params=pltpu.CompilerParams(
            dimension_semantics=("parallel", "arbitrary"),
            vmem_limit_bytes=vmem_limit,
        ),
    )(x_r, w1, b1, w2, b2)

    # Pass 2: elementwise rescale by the (Bt, C, 1) attention vector.
    out = pl.pallas_call(
        _rescale_kernel,
        out_shape=jax.ShapeDtypeStruct((B, C, HW), x.dtype),
        grid_spec=pltpu.PrefetchScalarGridSpec(
            num_scalar_prefetch=0,
            grid=(nb, nh),
            in_specs=[
                pl.BlockSpec((bt, C, 1), lambda i, h: (i, 0, 0)),
                pl.BlockSpec((bt, C, hw_tile), lambda i, h: (i, 0, h)),
            ],
            out_specs=pl.BlockSpec((bt, C, hw_tile), lambda i, h: (i, 0, h)),
        ),
        compiler_params=pltpu.CompilerParams(
            dimension_semantics=("parallel", "arbitrary"),
            vmem_limit_bytes=vmem_limit,
        ),
    )(mc, x_r)

    return out.reshape(B, C, H, W)


if __name__ == "__main__":
    key = jax.random.PRNGKey(0)
    kx, kp, kx2, kp2 = jax.random.split(key, 4)

    # Primary test: fused single-pass kernel (no pad / no slice wrapper).
    B, C, H, W = 2, 4, 16, 16
    x = jax.random.normal(kx, (B, C, H, W), jnp.float32)
    params = init_params(kp, in_channel=C, r=0.5)

    out = jax.block_until_ready(channel_attention(x, params))
    ref = channel_attention_ref(x, params)
    assert out.shape == x.shape and out.dtype == x.dtype
    if not jnp.allclose(out, ref, atol=1e-5, rtol=1e-5):
        raise AssertionError("fused Pallas kernel output mismatch vs JAX reference")

    # Secondary test: exercise the two-pass HW-tiled fallback (used when a single
    # (1, C, HW) plane exceeds the VMEM block budget), including the masked spatial tail.
    B2, C2, H2, W2 = 2, 8, 12, 12            # HW = 144 -> one full 128-tile + masked tail
    x2 = jax.random.normal(kx2, (B2, C2, H2, W2), jnp.float32)
    params2 = init_params(kp2, in_channel=C2, r=0.5)
    out2 = jax.block_until_ready(
        channel_attention(x2, params2, force_two_pass=True, hw_tile=128))
    ref2 = channel_attention_ref(x2, params2)
    assert out2.shape == x2.shape and out2.dtype == x2.dtype
    if not jnp.allclose(out2, ref2, atol=1e-5, rtol=1e-5):
        raise AssertionError("two-pass Pallas kernel output mismatch vs JAX reference")

    print("KERNEL_OK")
</pallas_src>

<mosaic_0001>
module attributes {stable_mosaic.version = 11 : i64} {
  func.func @_fused_kernel(%arg0: i32, %arg1: memref<1x4x256xf32, #tpu.memory_space<vmem>>, %arg2: memref<2x4x2xf32, #tpu.memory_space<vmem>>, %arg3: memref<2x1x2xf32, #tpu.memory_space<vmem>>, %arg4: memref<2x2x4xf32, #tpu.memory_space<vmem>>, %arg5: memref<2x1x4xf32, #tpu.memory_space<vmem>>, %arg6: memref<1x4x256xf32, #tpu.memory_space<vmem>>) attributes {dimension_semantics = [#tpu.dimension_semantics<parallel>], iteration_bounds = array<i64: 2>, scalar_prefetch = 0 : i64, scratch_operands = 0 : i64, tpu.core_type = #tpu.core_type<tc>, window_params = [{transform_indices = @transform_0, window_bounds = array<i64: 1, 4, 256>}, {pipeline_mode = #tpu.pipeline_mode<synchronous>, transform_indices = @transform_1, window_bounds = array<i64: 2, 4, 2>}, {pipeline_mode = #tpu.pipeline_mode<synchronous>, transform_indices = @transform_2, window_bounds = array<i64: 2, 1, 2>}, {pipeline_mode = #tpu.pipeline_mode<synchronous>, transform_indices = @transform_3, window_bounds = array<i64: 2, 2, 4>}, {pipeline_mode = #tpu.pipeline_mode<synchronous>, transform_indices = @transform_4, window_bounds = array<i64: 2, 1, 4>}, {transform_indices = @transform_5, window_bounds = array<i64: 1, 4, 256>}]} {
    %c0 = arith.constant 0 : index
    %c0_0 = arith.constant 0 : index
    %c0_1 = arith.constant 0 : index
    %0 = vector.load %arg1[%c0, %c0_0, %c0_1] : memref<1x4x256xf32, #tpu.memory_space<vmem>>, vector<1x4x256xf32>
    %cst = arith.constant dense<0xFF800000> : vector<1x4xf32>
    %1 = vector.multi_reduction <maximumf>, %0, %cst [2] : vector<1x4x256xf32> to vector<1x4xf32>
    %cst_2 = arith.constant dense<0.000000e+00> : vector<1x4xf32>
    %2 = vector.multi_reduction <add>, %0, %cst_2 [2] : vector<1x4x256xf32> to vector<1x4xf32>
    %cst_3 = arith.constant 3.906250e-03 : f32
    %3 = vector.broadcast %cst_3 : f32 to vector<1x4xf32>
    %4 = arith.mulf %2, %3 : vector<1x4xf32>
    %c0_4 = arith.constant 0 : index
    %c0_5 = arith.constant 0 : index
    %c0_6 = arith.constant 0 : index
    %5 = vector.load %arg2[%c0_4, %c0_5, %c0_6] : memref<2x4x2xf32, #tpu.memory_space<vmem>>, vector<1x4x2xf32>
    %6 = vector.shape_cast %5 : vector<1x4x2xf32> to vector<4x2xf32>
    %c0_7 = arith.constant 0 : index
    %c0_8 = arith.constant 0 : index
    %c0_9 = arith.constant 0 : index
    %7 = vector.load %arg3[%c0_7, %c0_8, %c0_9] : memref<2x1x2xf32, #tpu.memory_space<vmem>>, vector<1x1x2xf32>
    %8 = vector.shape_cast %7 : vector<1x1x2xf32> to vector<1x2xf32>
    %c0_10 = arith.constant 0 : index
    %c0_11 = arith.constant 0 : index
    %c0_12 = arith.constant 0 : index
    %9 = vector.load %arg4[%c0_10, %c0_11, %c0_12] : memref<2x2x4xf32, #tpu.memory_space<vmem>>, vector<1x2x4xf32>
    %10 = vector.shape_cast %9 : vector<1x2x4xf32> to vector<2x4xf32>
    %c0_13 = arith.constant 0 : index
    %c0_14 = arith.constant 0 : index
    %c0_15 = arith.constant 0 : index
    %11 = vector.load %arg5[%c0_13, %c0_14, %c0_15] : memref<2x1x4xf32, #tpu.memory_space<vmem>>, vector<1x1x4xf32>
    %12 = vector.shape_cast %11 : vector<1x1x4xf32> to vector<1x4xf32>
    %cst_16 = arith.constant dense<0.000000e+00> : vector<1x2xf32>
    %13 = tpu.matmul %1, %6, %cst_16 {dimension_numbers = #tpu.dot_dimension_numbers<[1], [0], [0], [1], [0, 0, 1, 1], [], []>} : vector<1x4xf32>, vector<4x2xf32>, vector<1x2xf32> -> vector<1x2xf32>
    %14 = arith.addf %13, %8 : vector<1x2xf32>
    %cst_17 = arith.constant 0.000000e+00 : f32
    %15 = vector.broadcast %cst_17 : f32 to vector<1x2xf32>
    %16 = arith.maximumf %14, %15 : vector<1x2xf32>
    %cst_18 = arith.constant dense<0.000000e+00> : vector<1x4xf32>
    %17 = tpu.matmul %16, %10, %cst_18 {dimension_numbers = #tpu.dot_dimension_numbers<[1], [0], [0], [1], [0, 0, 1, 1], [], []>} : vector<1x2xf32>, vector<2x4xf32>, vector<1x4xf32> -> vector<1x4xf32>
    %18 = arith.addf %17, %12 : vector<1x4xf32>
    %cst_19 = arith.constant 0.000000e+00 : f32
    %19 = vector.broadcast %cst_19 : f32 to vector<1x4xf32>
    %20 = arith.subf %19, %18 : vector<1x4xf32>
    %21 = math.exp %20 : vector<1x4xf32>
    %cst_20 = arith.constant 1.000000e+00 : f32
    %22 = vector.broadcast %cst_20 : f32 to vector<1x4xf32>
    %23 = arith.addf %22, %21 : vector<1x4xf32>
    %cst_21 = arith.constant 1.000000e+00 : f32
    %24 = vector.broadcast %cst_21 : f32 to vector<1x4xf32>
    %25 = arith.divf %24, %23 : vector<1x4xf32>
    %c1 = arith.constant 1 : index
    %c0_22 = arith.constant 0 : index
    %c0_23 = arith.constant 0 : index
    %26 = vector.load %arg2[%c1, %c0_22, %c0_23] : memref<2x4x2xf32, #tpu.memory_space<vmem>>, vector<1x4x2xf32>
    %27 = vector.shape_cast %26 : vector<1x4x2xf32> to vector<4x2xf32>
    %c1_24 = arith.constant 1 : index
    %c0_25 = arith.constant 0 : index
    %c0_26 = arith.constant 0 : index
    %28 = vector.load %arg3[%c1_24, %c0_25, %c0_26] : memref<2x1x2xf32, #tpu.memory_space<vmem>>, vector<1x1x2xf32>
    %29 = vector.shape_cast %28 : vector<1x1x2xf32> to vector<1x2xf32>
    %c1_27 = arith.constant 1 : index
    %c0_28 = arith.constant 0 : index
    %c0_29 = arith.constant 0 : index
    %30 = vector.load %arg4[%c1_27, %c0_28, %c0_29] : memref<2x2x4xf32, #tpu.memory_space<vmem>>, vector<1x2x4xf32>
    %31 = vector.shape_cast %30 : vector<1x2x4xf32> to vector<2x4xf32>
    %c1_30 = arith.constant 1 : index
    %c0_31 = arith.constant 0 : index
    %c0_32 = arith.constant 0 : index
    %32 = vector.load %arg5[%c1_30, %c0_31, %c0_32] : memref<2x1x4xf32, #tpu.memory_space<vmem>>, vector<1x1x4xf32>
    %33 = vector.shape_cast %32 : vector<1x1x4xf32> to vector<1x4xf32>
    %cst_33 = arith.constant dense<0.000000e+00> : vector<1x2xf32>
    %34 = tpu.matmul %4, %27, %cst_33 {dimension_numbers = #tpu.dot_dimension_numbers<[1], [0], [0], [1], [0, 0, 1, 1], [], []>} : vector<1x4xf32>, vector<4x2xf32>, vector<1x2xf32> -> vector<1x2xf32>
    %35 = arith.addf %34, %29 : vector<1x2xf32>
    %cst_34 = arith.constant 0.000000e+00 : f32
    %36 = vector.broadcast %cst_34 : f32 to vector<1x2xf32>
    %37 = arith.maximumf %35, %36 : vector<1x2xf32>
    %cst_35 = arith.constant dense<0.000000e+00> : vector<1x4xf32>
    %38 = tpu.matmul %37, %31, %cst_35 {dimension_numbers = #tpu.dot_dimension_numbers<[1], [0], [0], [1], [0, 0, 1, 1], [], []>} : vector<1x2xf32>, vector<2x4xf32>, vector<1x4xf32> -> vector<1x4xf32>
    %39 = arith.addf %38, %33 : vector<1x4xf32>
    %cst_36 = arith.constant 0.000000e+00 : f32
    %40 = vector.broadcast %cst_36 : f32 to vector<1x4xf32>
    %41 = arith.subf %40, %39 : vector<1x4xf32>
    %42 = math.exp %41 : vector<1x4xf32>
    %cst_37 = arith.constant 1.000000e+00 : f32
    %43 = vector.broadcast %cst_37 : f32 to vector<1x4xf32>
    %44 = arith.addf %43, %42 : vector<1x4xf32>
    %cst_38 = arith.constant 1.000000e+00 : f32
    %45 = vector.broadcast %cst_38 : f32 to vector<1x4xf32>
    %46 = arith.divf %45, %44 : vector<1x4xf32>
    %47 = arith.addf %25, %46 : vector<1x4xf32>
    %cst_39 = arith.constant 0.000000e+00 : f32
    %48 = vector.broadcast %cst_39 : f32 to vector<1x4xf32>
    %49 = arith.subf %48, %47 : vector<1x4xf32>
    %50 = math.exp %49 : vector<1x4xf32>
    %cst_40 = arith.constant 1.000000e+00 : f32
    %51 = vector.broadcast %cst_40 : f32 to vector<1x4xf32>
    %52 = arith.addf %51, %50 : vector<1x4xf32>
    %cst_41 = arith.constant 1.000000e+00 : f32
    %53 = vector.broadcast %cst_41 : f32 to vector<1x4xf32>
    %54 = arith.divf %53, %52 : vector<1x4xf32>
    %55 = vector.shape_cast %54 : vector<1x4xf32> to vector<1x4x1xf32>
    %56 = vector.broadcast %55 : vector<1x4x1xf32> to vector<1x4x256xf32>
    %57 = arith.mulf %0, %56 : vector<1x4x256xf32>
    %c0_42 = arith.constant 0 : index
    %c0_43 = arith.constant 0 : index
    %c0_44 = arith.constant 0 : index
    %58 = vector.load %arg6[%c0_42, %c0_43, %c0_44] : memref<1x4x256xf32, #tpu.memory_space<vmem>>, vector<1x4x256xf32>
    tpu.vector_store %arg6[%c0_42, %c0_43, %c0_44], %57 {strides = array<i32>} : memref<1x4x256xf32, #tpu.memory_space<vmem>>, vector<1x4x256xf32>,
    return
  }
  func.func @transform_0(%arg0: i32) -> (i32, i32, i32) {
    %c0_i32 = arith.constant 0 : i32
    %c0_i32_0 = arith.constant 0 : i32
    %c0_i32_1 = arith.constant 0 : i32
    return %arg0, %c0_i32, %c0_i32_0 : i32, i32, i32
  }
  func.func @transform_1(%arg0: i32) -> (i32, i32, i32) {
    %c0_i32 = arith.constant 0 : i32
    %c0_i32_0 = arith.constant 0 : i32
    %c0_i32_1 = arith.constant 0 : i32
    %c0_i32_2 = arith.constant 0 : i32
    return %c0_i32, %c0_i32_0, %c0_i32_1 : i32, i32, i32
  }
  func.func @transform_2(%arg0: i32) -> (i32, i32, i32) {
    %c0_i32 = arith.constant 0 : i32
    %c0_i32_0 = arith.constant 0 : i32
    %c0_i32_1 = arith.constant 0 : i32
    %c0_i32_2 = arith.constant 0 : i32
    return %c0_i32, %c0_i32_0, %c0_i32_1 : i32, i32, i32
  }
  func.func @transform_3(%arg0: i32) -> (i32, i32, i32) {
    %c0_i32 = arith.constant 0 : i32
    %c0_i32_0 = arith.constant 0 : i32
    %c0_i32_1 = arith.constant 0 : i32
    %c0_i32_2 = arith.constant 0 : i32
    return %c0_i32, %c0_i32_0, %c0_i32_1 : i32, i32, i32
  }
  func.func @transform_4(%arg0: i32) -> (i32, i32, i32) {
    %c0_i32 = arith.constant 0 : i32
    %c0_i32_0 = arith.constant 0 : i32
    %c0_i32_1 = arith.constant 0 : i32
    %c0_i32_2 = arith.constant 0 : i32
    return %c0_i32, %c0_i32_0, %c0_i32_1 : i32, i32, i32
  }
  func.func @transform_5(%arg0: i32) -> (i32, i32, i32) {
    %c0_i32 = arith.constant 0 : i32
    %c0_i32_0 = arith.constant 0 : i32
    %c0_i32_1 = arith.constant 0 : i32
    return %arg0, %c0_i32, %c0_i32_0 : i32, i32, i32
  }
}

</mosaic_0001>

<bundles_post_ra>
// kernel: channel_attention.1
= control target key start
LH: loop header
LB: loop body
LE: loop exit
PB: predicated region body
PF: predicated region fallthrough
CT: control target
= control target key end

     0   :  { %s782_s18 = smov 0   ;;  %s852_s0 = inlined_call_operand.vmem [shape: f32[2,4,256], index: 0, kind: input, shape index: {}]   ;;  %s853_s1 = inlined_call_operand.vmem [shape: f32[2,4,2], index: 1, kind: input, shape index: {}]   ;;  %s854_s2 = inlined_call_operand.vmem [shape: f32[2,1,2], index: 2, kind: input, shape index: {}]   ;;  %s855_s3 = inlined_call_operand.vmem [shape: f32[2,2,4], index: 3, kind: input, shape index: {}]   ;;  %s856_s4 = inlined_call_operand.vmem [shape: f32[2,1,4], index: 4, kind: input, shape index: {}]   ;;  %s857_s5 = inlined_call_operand.vmem [shape: f32[2,4,256], index: 5, kind: output, shape index: {}]  }
   0x1 LB: > { %s664_s19 = sadd.s32 4294967295, %s747_s18   ;;  %p668_p0 = scmp.ge.s32.totalorder %s747_s18, 1  ;;  %s747_s18 = sphi %s782_s18, %s15_s18  }
   0x2   : > { %p187_p1 = scmp.lt.s32.totalorder %s747_s18, 3 }
   0x4   : > { %p188_p2 = pnand %p668_p0, %p187_p1 }
   0x5   : > { %p215_p3 = scmp.lt.s32.totalorder (!%p188_p2), %s664_s19, 1  ;;  %vm229_vm0 = vcmask (!%p188_p2), 1043456   ;;  %v749_v8 = vmov (!%p188_p2), 0.0   ;;  %v241_v9 = vld [vmem:[%s853_s1] sm:$0xf] (!%p188_p2)  ;;  %vm750_vm1 = vmmov (!%p188_p2), 0   ;;  %v246_v10 = vlaneseq (!%p188_p2) }
   0x6   : > { %191 = sbr.rel (%p188_p2) target bundleno = 782 (0x30e), region = 40  ;;  %697 = vmatprep.subr.mxu0 (!%p188_p2), %v749_v8  ;;  %702 = vmatprep.subr.mxu1 (!%p188_p2), %v749_v8  ;;  %vm252_vm2 = vcmask (!%p188_p2), 31744   ;;  %v677_v16 = vld [vmem:[%s853_s1 + $0x4] sm:$0xf] (!%p188_p2)  ;;  %v243_v20 = vld [vmem:[%s855_s3] sm:$0x3] (!%p188_p2) }
   0x7   : > { %698 = vmatpush3.msk.msra.mxu0 (!%p188_p2), %vm229_vm0, %v241_v9  ;;  %699 = vmatprep.mubr.msk.f32.mxu0 (!%p188_p2), %vm750_vm1, %v749_v8  ;;  %v247_v11 = vand.u32 (!%p188_p2), 127, %v246_v10  ;;  %v814_v12 = vshrl.u32 (!%p188_p2), %v246_v10, 7  ;;  %vm333_vm3 = vcmask (!%p188_p2), 1041408   ;;  %v242_v21 = vld [vmem:[%s854_s2] sm:$0x1] (!%p188_p2)  ;;  %vm329_vm4 = vcmask (!%p188_p2), 15360  }
   0x8   : > { %707 = vmatprep.subr.mxu0 (!%p188_p2), %v749_v8  ;;  %704 = vmatprep.mubr.msk.f32.mxu1 (!%p188_p2), %vm750_vm1, %v749_v8  ;;  %v679_v26 = vld [vmem:[%s855_s3 + $0x2] sm:$0x3] (!%p188_p2)  ;;  %v678_v27 = vld [vmem:[%s854_s2 + $0x1] sm:$0x1] (!%p188_p2)  ;;  %v244_v32 = vld [vmem:[%s856_s4] sm:$0x1] (!%p188_p2) }
   0x9   : > { %v250_v13 = vsub.s32 (!%p188_p2), %v247_v11, %v814_v12  ;;  %703 = vmatpush3.msk.msra.mxu1 (!%p188_p2), %vm333_vm3, %v243_v20  ;;  %v680_v37 = vld [vmem:[%s856_s4 + $0x1] sm:$0x1] (!%p188_p2)  ;;  %v593_v55 = vsub.s32 (!%p188_p2), 0, %v814_v12  ;;  %v751_v58 = vmov (!%p188_p2), 839922192  }
   0xa   : > { %712 = vmatprep.subr.mxu1 (!%p188_p2), %v749_v8  ;;  %v600_v59 = vunpack.c.l.s4 (!%p188_p2), %v751_v58 }
   0xc   : > { %v601_v60 = vunpack.c.0.s8 (!%p188_p2), %v600_v59 }
   0xd   : > { %s859_s19 = smov (!%p215_p3, %s664_s19), 1 }
   0xe   : > { %s687_s20 = sshll.u32 %s859_s19, 3  ;;  %v604_v61 = vsub.s32 %v601_v60, %v814_v12 }
   0xf   : > { %s219_s23 = scalar_lea.vmem %s852_s0, %s687_s20  ;;  %s224_s17 = scalar_lea.vmem %s857_s5, %s687_s20 }
  0x10   : > { %v798_v0 = vld [vmem:[%s219_s23] sm:$0xff] }
  0x11   : > { %v227_v1 = vcombine.high %v798_v0, %v798_v0  ;;  %v230_v2 = vsel %vm229_vm0, %v798_v0, -inf  ;;  %v235_v4 = vsel %vm229_vm0, %v798_v0, 0.0 }
  0x13   : > { %v231_v3 = vsel %vm229_vm0, %v227_v1, -inf  ;;  %v236_v5 = vsel %vm229_vm0, %v227_v1, 0.0 }
  0x14   : > { %v232_v6 = vmax.f32 %v230_v2, %v231_v3  ;;  %v237_v7 = vadd.f32 %v236_v5, %v235_v4 }
  0x16   : > { %233 = vmax.xlane.f32.xlu0 %v232_v6 }
  0x1a   : > { %238 = vadd.xlane.f32.xlu0 %v237_v7 }
  0xa3   : > { %v234_v14 = vpop.xlane.xlu0 %233 }
  0xa4   : > { %v251_v15 = vrot.slane %v234_v14, %v250_v13 }
  0xa6   : > { %700 = vmatmul.mubr.msk.f32.vlgmr.msra.gmra.mrb[0].mxu0 %vm252_vm2, %v251_v15 }
  0xa7   : > { %v239_v17 = vpop.xlane.xlu0 %238  ;;  %708 = vmatpush3.msk.msra.mxu0 %vm229_vm0, %v677_v16  ;;  %709 = vmatprep.mubr.msk.f32.mxu0 %vm750_vm1, %v749_v8 }
  0xa8   : > { %v240_v18 = vmul.f32 0.00390625, %v239_v17 }
  0xaa   : > { %v425_v19 = vrot.slane %v240_v18, %v250_v13 }
  0xac   : > { %710 = vmatmul.mubr.msk.f32.vlgmr.msra.gmra.mrb[2].mxu0 %vm252_vm2, %v425_v19 }
 0x179   : > { %v324_v22 = vpop.f32.mrb[0].mxu0 }
 0x17a   : > { %v325_v23 = vadd.f32 %v324_v22, %v242_v21  ;;  %v701_v24 = vpop.f32.mrb[1].mxu0 }
 0x17c   : > { %v328_v25 = vmax.f32 %v325_v23, 0.0 }
 0x17e   : > { %705 = vmatmul.mubr.msk.f32.vlgmr.msra.gmra.mrb[0].mxu1 %vm329_vm4, %v328_v25 }
 0x17f   : > { %v497_v28 = vpop.f32.mrb[2].mxu0  ;;  %713 = vmatpush3.msk.msra.mxu1 %vm333_vm3, %v679_v26  ;;  %714 = vmatprep.mubr.msk.f32.mxu1 %vm750_vm1, %v749_v8 }
 0x180   : > { %v498_v29 = vadd.f32 %v678_v27, %v497_v28  ;;  %v711_v30 = vpop.f32.mrb[3].mxu0 }
 0x182   : > { %v501_v31 = vmax.f32 %v498_v29, 0.0 }
 0x184   : > { %715 = vmatmul.mubr.msk.f32.vlgmr.msra.gmra.mrb[2].mxu1 %vm329_vm4, %v501_v31 }
 0x251   : > { %v403_v33 = vpop.f32.mrb[0].mxu1 }
 0x252   : > { %v404_v34 = vadd.f32 %v403_v33, %v244_v32  ;;  %v706_v35 = vpop.f32.mrb[1].mxu1 }
 0x254   : > { %v407_v36 = vsub.f32 0.0, %v404_v34 }
 0x256   : > { %v408_v38 = vmul.f32 1.442695, %v407_v36 }
 0x257   : > { %v574_v39 = vpop.f32.mrb[2].mxu1 }
 0x258   : > { %v575_v40 = vadd.f32 %v680_v37, %v574_v39  ;;  %v716_v41 = vpop.f32.mrb[3].mxu1  ;;  %729 = vpow2.f32 %v408_v38 }
 0x25a   : > { %v578_v42 = vsub.f32 0.0, %v575_v40 }
 0x25c   : > { %v579_v43 = vmul.f32 1.442695, %v578_v42 }
 0x25e   : > { %731 = vpow2.f32 %v579_v43 }
 0x262   : > { %v730_v44 = vpop.eup %729 }
 0x263   : > { %v410_v45 = vadd.f32 1.0, %v730_v44 }
 0x265   : > { %733 = vrcp.f32 %v410_v45 }
 0x268   : > { %v732_v46 = vpop.eup %731 }
 0x269   : > { %v581_v47 = vadd.f32 1.0, %v732_v46 }
 0x26b   : > { %735 = vrcp.f32 %v581_v47 }
 0x26f   : > { %v734_v48 = vpop.eup %733 }
 0x275   : > { %v736_v49 = vpop.eup %735 }
 0x276   : > { %v584_v50 = vadd.f32 %v736_v49, %v734_v48 }
 0x278   : > { %v585_v51 = vsub.f32 0.0, %v584_v50 }
 0x27a   : > { %v586_v52 = vmul.f32 1.442695, %v585_v51 }
 0x27c   : > { %737 = vpow2.f32 %v586_v52 }
 0x286   : > { %v738_v53 = vpop.eup %737 }
 0x287   : > { %v588_v54 = vadd.f32 1.0, %v738_v53 }
 0x289   : > { %739 = vrcp.f32 %v588_v54 }
 0x293   : > { %v740_v56 = vpop.eup %739 }
 0x294   : > { %v594_v57 = vrot.slane %v740_v56, %v593_v55 }
 0x296   : > { %596 = vbcast.lane.b32.xlu1 %v594_v57, 256 }
 0x308   : > { %v597_v62 = vpop.permute.xlu1 %596 }
 0x309   : > { %v605_v63 = vrot.slane %v597_v62, %v604_v61 }
 0x30b   : > { %v607_v1 = vmul.f32 %v605_v63, %v798_v0 }
 0x30d   : > { %608 = vst [vmem:[%s224_s17] sm:$0xff] %v607_v1 }
 0x30e PF: > { %s15_s18 = sadd.s32 1, %s747_s18  }
 0x30f   : > { %p12_p4 = scmp.ge.s32.totalorder %s15_s18, 4  }
 0x311   :  { %14 = sbr.rel (!%p12_p4) target bundleno = 1 (0x1), region = 74 }

</bundles_post_ra>
